<compile_context>
chip_gen: v5e
topology: v5e:2x2
jax: 0.10.0
libtpu: 0.0.40
codegen_flags: <defaults>
</compile_context>

<pallas_src>
import functools
from typing import NamedTuple

import jax
import jax.numpy as jnp
from jax.experimental import pallas as pl
from jax.experimental.pallas import tpu as pltpu

_INV_SQRT2 = 0.7071067811865476
_SQRT_2_OVER_PI = 0.7978845608028654


def _gelu_f32(b, approximate):
    if approximate:
        # tanh approximation -> runs on the EUP slot (opt-in; numerics differ
        # slightly from torch.nn.GELU() default).
        return 0.5 * b * (1.0 + jnp.tanh(_SQRT_2_OVER_PI * (b + 0.044715 * b * b * b)))
    # erf-based GELU, matching torch.nn.GELU() default.
    return 0.5 * b * (1.0 + jax.lax.erf(b * jnp.float32(_INV_SQRT2)))


# --------------------------------------------------------------------------- #
# Kernels
# --------------------------------------------------------------------------- #
def _geglu_kernel_collapsed(x_ref, w_ref, b_ref, o_ref, *, tn, approximate):
    # grid = (N/tn, M/tm), M innermost; full K in one dot (no accumulator scratch).
    acc = jnp.dot(x_ref[...], w_ref[...], preferred_element_type=jnp.float32)
    acc = acc + b_ref[...]                               # bias kept in f32
    a, g_in = acc[:, :tn], acc[:, tn:]                   # [a-half | b-half]
    o_ref[...] = (a * _gelu_f32(g_in, approximate)).astype(o_ref.dtype)


def _geglu_kernel_reduce(x_ref, w_ref, b_ref, o_ref, acc_ref, *, tn, approximate):
    # grid = (M/tm, N/tn, K/tk); reduction over K with an f32 VMEM accumulator.
    k = pl.program_id(2)

    @pl.when(k == 0)
    def _():
        acc_ref[...] = jnp.zeros_like(acc_ref)

    acc_ref[...] += jnp.dot(x_ref[...], w_ref[...],
                            preferred_element_type=jnp.float32)

    @pl.when(k == pl.num_programs(2) - 1)
    def _():
        acc = acc_ref[...] + b_ref[...]
        a, g_in = acc[:, :tn], acc[:, tn:]
        o_ref[...] = (a * _gelu_f32(g_in, approximate)).astype(o_ref.dtype)


# --------------------------------------------------------------------------- #
# Tiling / hardware helpers
# --------------------------------------------------------------------------- #
def _round_up(v, m):
    return (v + m - 1) // m * m


def _cdiv(a, b):
    return (a + b - 1) // b


def _sublane(dtype):
    # 8 sublanes for f32, 16 for bf16, 32 for int8/fp8.
    return max(8, 32 // jnp.dtype(dtype).itemsize)


def _balanced_tile(dim, t_max, mult):
    # Split dim into the fewest <= t_max tiles, balanced, rounded up to mult.
    nb = max(1, _cdiv(dim, t_max))
    return min(t_max, _round_up(_cdiv(dim, nb), mult))


def _vmem_capacity_bytes():
    try:
        return int(pltpu.get_tpu_info().vmem_capacity_bytes)
    except Exception:
        return 64 * 1024 * 1024  # conservative (v7x-sized) fallback


# --------------------------------------------------------------------------- #
# Parameter preparation (one-time) and apply
# --------------------------------------------------------------------------- #
class _GeGLUConfig(NamedTuple):
    n: int
    k: int
    n_pad: int
    k_pad: int
    tn: int
    tk: int
    tm_max: int
    collapse: bool
    vmem_limit: int
    approximate: bool


class GeGLUParams(NamedTuple):
    w_fused: jax.Array     # (K_pad, 2*N_pad), compute dtype
    b_fused: jax.Array     # (1, 2*N_pad), f32
    cfg: _GeGLUConfig


def geglu_prepare(raw_params, *, compute_dtype=None, approximate=False,
                  tm_max=256, tn_max=None, tk=2048, k_collapse=None):
    """One-time setup: pad + interleave Wa|Wb into a single fused weight, cast to
    the MXU compute dtype, and pick generation-aware tiles. Do NOT call per step."""
    wa, ba, wb, bb = raw_params
    K, N = wa.shape
    compute_dtype = jnp.dtype(compute_dtype) if compute_dtype is not None else jnp.dtype(wa.dtype)
    itemsize = compute_dtype.itemsize

    vmem_cap = _vmem_capacity_bytes()
    vmem_limit = min(int(vmem_cap * 0.7), 96 * 1024 * 1024)
    big_vmem = vmem_cap >= 100 * 1024 * 1024            # v5e/v6e (128 MiB); v7x has 64 MiB

    if tn_max is None:
        tn_max = 512 if big_vmem else 256
    if k_collapse is None:
        k_collapse = 8192 if big_vmem else 4096

    tn = _balanced_tile(N, tn_max, 128)                 # tn always a multiple of 128
    N_pad = _round_up(N, tn)

    # Collapse the K reduction entirely when the resident (double-buffered) blocks fit VMEM.
    k_pad_collapsed = _round_up(K, 128)
    est = (2 * (tm_max * k_pad_collapsed + k_pad_collapsed * 2 * tn) * itemsize  # x + w, 2 bufs
           + 2 * tm_max * tn * itemsize                                          # out, 2 bufs
           + tm_max * 2 * tn * 4)                                                # f32 epilogue
    collapse = (K <= k_collapse) and (est <= int(0.8 * vmem_limit))

    if collapse:
        K_pad, tk_eff = k_pad_collapsed, 0
    else:
        K_pad, tk_eff = _round_up(K, tk), tk

    # Zero-pad (padding contributes zeros to the matmul) and interleave per tn
    # block so one (K_pad, 2*tn) weight tile yields [a-half | b-half] per dot.
    wa_p = jnp.pad(wa, ((0, K_pad - K), (0, N_pad - N)))
    wb_p = jnp.pad(wb, ((0, K_pad - K), (0, N_pad - N)))
    ba_p = jnp.pad(ba, ((0, 0), (0, N_pad - N)))
    bb_p = jnp.pad(bb, ((0, 0), (0, N_pad - N)))

    nb = N_pad // tn
    w_fused = jnp.concatenate(
        [wa_p.reshape(K_pad, nb, tn), wb_p.reshape(K_pad, nb, tn)], axis=2
    ).reshape(K_pad, 2 * N_pad).astype(compute_dtype)
    b_fused = jnp.concatenate(
        [ba_p.reshape(1, nb, tn), bb_p.reshape(1, nb, tn)], axis=2
    ).reshape(1, 2 * N_pad).astype(jnp.float32)

    cfg = _GeGLUConfig(n=N, k=K, n_pad=N_pad, k_pad=K_pad, tn=tn, tk=tk_eff,
                       tm_max=tm_max, collapse=collapse, vmem_limit=vmem_limit,
                       approximate=approximate)
    return GeGLUParams(w_fused=w_fused, b_fused=b_fused, cfg=cfg)


@functools.partial(jax.jit, static_argnames=("cfg",))
def _geglu_2d(x2d, w_fused, b_fused, *, cfg):
    M = x2d.shape[0]
    sub = _sublane(x2d.dtype)
    tm = _balanced_tile(M, cfg.tm_max, sub)
    M_pad = _round_up(M, tm)
    nb_m, nb_n = M_pad // tm, cfg.n_pad // cfg.tn

    # v7x megacore: make sure at least one parallel axis has >= 2 blocks.
    if nb_m == 1 and nb_n == 1 and M > sub:
        tm = _round_up(_cdiv(M, 2), sub)
        M_pad = _round_up(M, tm)
        nb_m = M_pad // tm

    x_p = jnp.pad(x2d, ((0, M_pad - M), (0, cfg.k_pad - cfg.k)))
    tn = cfg.tn

    if cfg.collapse:
        # M innermost: the (K_pad, 2*tn) weight block index is unchanged across
        # consecutive grid steps, so Pallas skips its re-DMA (weight streamed once).
        out = pl.pallas_call(
            functools.partial(_geglu_kernel_collapsed, tn=tn,
                              approximate=cfg.approximate),
            out_shape=jax.ShapeDtypeStruct((M_pad, cfg.n_pad), x2d.dtype),
            grid_spec=pltpu.PrefetchScalarGridSpec(
                num_scalar_prefetch=0,
                grid=(nb_n, nb_m),
                in_specs=[
                    pl.BlockSpec((tm, cfg.k_pad), lambda j, i: (i, 0)),        # x
                    pl.BlockSpec((cfg.k_pad, 2 * tn), lambda j, i: (0, j)),    # [Wa|Wb]
                    pl.BlockSpec((1, 2 * tn), lambda j, i: (0, j)),            # [ba|bb]
                ],
                out_specs=pl.BlockSpec((tm, tn), lambda j, i: (i, j)),
            ),
            compiler_params=pltpu.CompilerParams(
                dimension_semantics=("parallel", "parallel"),
                vmem_limit_bytes=cfg.vmem_limit,
            ),
        )(x_p, w_fused, b_fused)
    else:
        out = pl.pallas_call(
            functools.partial(_geglu_kernel_reduce, tn=tn,
                              approximate=cfg.approximate),
            out_shape=jax.ShapeDtypeStruct((M_pad, cfg.n_pad), x2d.dtype),
            grid_spec=pltpu.PrefetchScalarGridSpec(
                num_scalar_prefetch=0,
                grid=(nb_m, nb_n, cfg.k_pad // cfg.tk),
                in_specs=[
                    pl.BlockSpec((tm, cfg.tk), lambda i, j, k: (i, k)),        # x
                    pl.BlockSpec((cfg.tk, 2 * tn), lambda i, j, k: (k, j)),    # [Wa|Wb]
                    pl.BlockSpec((1, 2 * tn), lambda i, j, k: (0, j)),         # [ba|bb]
                ],
                out_specs=pl.BlockSpec((tm, tn), lambda i, j, k: (i, j)),
                scratch_shapes=[pltpu.VMEM((tm, 2 * tn), jnp.float32)],
            ),
            compiler_params=pltpu.CompilerParams(
                dimension_semantics=("parallel", "parallel", "arbitrary"),
                vmem_limit_bytes=cfg.vmem_limit,
            ),
        )(x_p, w_fused, b_fused)

    return out[:M, :cfg.n]


def geglu_apply(params, x):
    """x: [..., input_dim]  ->  [..., output_dim], like the PyTorch GeGLU.forward."""
    cfg = params.cfg
    orig_dtype = x.dtype
    lead = x.shape[:-1]
    x2d = x.reshape(-1, cfg.k).astype(params.w_fused.dtype)   # explicit compute dtype
    out = _geglu_2d(x2d, params.w_fused, params.b_fused, cfg=cfg)
    out = out.reshape(*lead, cfg.n)
    return out if out.dtype == orig_dtype else out.astype(orig_dtype)


# --------------------------------------------------------------------------- #
# Init / reference / demo
# --------------------------------------------------------------------------- #
def init_params(key, input_dim, output_dim, dtype=jnp.float32):
    # Deterministic init mimicking nn.Linear's U(-1/sqrt(in), 1/sqrt(in)).
    kA_w, kA_b, kB_w, kB_b = jax.random.split(key, 4)
    bound = 1.0 / jnp.sqrt(input_dim)
    wa = jax.random.uniform(kA_w, (input_dim, output_dim), dtype, -bound, bound)
    ba = jax.random.uniform(kA_b, (1, output_dim), dtype, -bound, bound)
    wb = jax.random.uniform(kB_w, (input_dim, output_dim), dtype, -bound, bound)
    bb = jax.random.uniform(kB_b, (1, output_dim), dtype, -bound, bound)
    return wa, ba, wb, bb


def geglu_reference(x, raw_params):
    wa, ba, wb, bb = raw_params
    a = x @ wa + ba[0]
    b = x @ wb + bb[0]
    return a * jax.nn.gelu(b, approximate=False)


if __name__ == "__main__":
    batch, seq, input_dim, output_dim = 2, 8, 128, 128

    key = jax.random.PRNGKey(0)
    kx, kp = jax.random.split(key)
    x = jax.random.normal(kx, (batch, seq, input_dim), jnp.float32)
    raw = init_params(kp, input_dim, output_dim)
    ref = geglu_reference(x, raw)

    # f32 path: exact parity with the torch.nn.GELU() (erf) reference.
    params_f32 = geglu_prepare(raw, compute_dtype=jnp.float32)
    out = jax.block_until_ready(geglu_apply(params_f32, x))
    assert out.shape == (batch, seq, output_dim)
    assert jnp.allclose(out, ref, atol=1e-5, rtol=1e-5), "f32 mismatch vs reference"

    # bf16 fast path (bf16 MXU operands, f32 accumulation + f32 epilogue).
    params_bf16 = geglu_prepare(raw, compute_dtype=jnp.bfloat16)
    out_bf16 = jax.block_until_ready(geglu_apply(params_bf16, x.astype(jnp.bfloat16)))
    assert out_bf16.shape == (batch, seq, output_dim)
    assert jnp.allclose(out_bf16.astype(jnp.float32), ref, atol=6e-2, rtol=6e-2), \
        "bf16 mismatch vs reference"

    print("KERNEL_OK")
</pallas_src>

<mosaic_0001>
module attributes {stable_mosaic.version = 11 : i64} {
  func.func @_geglu_kernel_collapsed(%arg0: i32, %arg1: i32, %arg2: memref<8x128xf32, #tpu.memory_space<vmem>>, %arg3: memref<128x256xf32, #tpu.memory_space<vmem>>, %arg4: memref<1x256xf32, #tpu.memory_space<vmem>>, %arg5: memref<8x128xf32, #tpu.memory_space<vmem>>) attributes {dimension_semantics = [#tpu.dimension_semantics<parallel>, #tpu.dimension_semantics<parallel>], iteration_bounds = array<i64: 1, 2>, scalar_prefetch = 0 : i64, scratch_operands = 0 : i64, tpu.core_type = #tpu.core_type<tc>, window_params = [{transform_indices = @transform_0, window_bounds = array<i64: 8, 128>}, {transform_indices = @transform_1, window_bounds = array<i64: 128, 256>}, {transform_indices = @transform_2, window_bounds = array<i64: 1, 256>}, {transform_indices = @transform_3, window_bounds = array<i64: 8, 128>}]} {
    %c0 = arith.constant 0 : index
    %c0_0 = arith.constant 0 : index
    %0 = vector.load %arg2[%c0, %c0_0] : memref<8x128xf32, #tpu.memory_space<vmem>>, vector<8x128xf32>
    %c0_1 = arith.constant 0 : index
    %c0_2 = arith.constant 0 : index
    %1 = vector.load %arg3[%c0_1, %c0_2] : memref<128x256xf32, #tpu.memory_space<vmem>>, vector<128x256xf32>
    %cst = arith.constant dense<0.000000e+00> : vector<8x256xf32>
    %2 = tpu.matmul %0, %1, %cst {dimension_numbers = #tpu.dot_dimension_numbers<[1], [0], [0], [1], [0, 0, 1, 1], [], []>} : vector<8x128xf32>, vector<128x256xf32>, vector<8x256xf32> -> vector<8x256xf32>
    %c0_3 = arith.constant 0 : index
    %c0_4 = arith.constant 0 : index
    %3 = vector.load %arg4[%c0_3, %c0_4] : memref<1x256xf32, #tpu.memory_space<vmem>>, vector<1x256xf32>
    %4 = vector.broadcast %3 : vector<1x256xf32> to vector<8x256xf32>
    %5 = arith.addf %2, %4 : vector<8x256xf32>
    %6 = vector.extract_strided_slice %5 {offsets = [0, 0], sizes = [8, 128], strides = [1, 1]} : vector<8x256xf32> to vector<8x128xf32>
    %7 = vector.extract_strided_slice %5 {offsets = [0, 128], sizes = [8, 128], strides = [1, 1]} : vector<8x256xf32> to vector<8x128xf32>
    %cst_5 = arith.constant 5.000000e-01 : f32
    %8 = vector.broadcast %cst_5 : f32 to vector<8x128xf32>
    %9 = arith.mulf %8, %7 : vector<8x128xf32>
    %cst_6 = arith.constant 0.707106769 : f32
    %10 = vector.broadcast %cst_6 : f32 to vector<8x128xf32>
    %11 = arith.mulf %7, %10 : vector<8x128xf32>
    %12 = math.erf %11 : vector<8x128xf32>
    %cst_7 = arith.constant 1.000000e+00 : f32
    %13 = vector.broadcast %cst_7 : f32 to vector<8x128xf32>
    %14 = arith.addf %13, %12 : vector<8x128xf32>
    %15 = arith.mulf %9, %14 : vector<8x128xf32>
    %16 = arith.mulf %6, %15 : vector<8x128xf32>
    %c0_8 = arith.constant 0 : index
    %c0_9 = arith.constant 0 : index
    %17 = vector.load %arg5[%c0_8, %c0_9] : memref<8x128xf32, #tpu.memory_space<vmem>>, vector<8x128xf32>
    tpu.vector_store %arg5[%c0_8, %c0_9], %16 {strides = array<i32>} : memref<8x128xf32, #tpu.memory_space<vmem>>, vector<8x128xf32>,
    return
  }
  func.func @transform_0(%arg0: i32, %arg1: i32) -> (i32, i32) {
    %c0_i32 = arith.constant 0 : i32
    %c0_i32_0 = arith.constant 0 : i32
    return %arg1, %c0_i32 : i32, i32
  }
  func.func @transform_1(%arg0: i32, %arg1: i32) -> (i32, i32) {
    %c0_i32 = arith.constant 0 : i32
    %c0_i32_0 = arith.constant 0 : i32
    return %c0_i32, %arg0 : i32, i32
  }
  func.func @transform_2(%arg0: i32, %arg1: i32) -> (i32, i32) {
    %c0_i32 = arith.constant 0 : i32
    %c0_i32_0 = arith.constant 0 : i32
    return %c0_i32, %arg0 : i32, i32
  }
  func.func @transform_3(%arg0: i32, %arg1: i32) -> (i32, i32) {
    %c0_i32 = arith.constant 0 : i32
    return %arg1, %arg0 : i32, i32
  }
}

</mosaic_0001>

<bundles_post_ra>
// kernel: _geglu_2d.1
= control target key start
LH: loop header
LB: loop body
LE: loop exit
PB: predicated region body
PF: predicated region fallthrough
CT: control target
= control target key end

     0   :  { %8 = vsyncpa [#allocation3], 0  ;;  %s952_s0 = inlined_call_operand.hbm [shape: f32[16,128], index: 0, kind: input, shape index: {}]   ;;  %s953_s1 = inlined_call_operand.hbm [shape: f32[128,256], index: 1, kind: input, shape index: {}]   ;;  %s954_s2 = inlined_call_operand.hbm [shape: f32[1,256], index: 2, kind: input, shape index: {}]   ;;  %s955_s3 = inlined_call_operand.hbm [shape: f32[16,128], index: 3, kind: output, shape index: {}]  }
   0x1   :  { %10 = vsyncpa [#allocation3 + $0x1], 0 }
   0x2   :  { %11 = vsyncpa [#allocation6], 0 }
   0x3   :  { %12 = vsyncpa [#allocation4], 0 }
   0x4   :  { %14 = vsyncpa [#allocation4 + $0x1], 0  ;;  %s801_s12 = smov 0   ;;  %s803_s13 = smov 0  }
   0x5   :  { %s805_s14 = smov 0   ;;  %s807_s15 = smov 0  }
   0x6   :  { %s809_s16 = smov 0   ;;  %s811_s17 = smov 0  }
   0x7 LB: > { %s494_s18 = sadd.s32 4294967295, %s775_s17   ;;  %p496_p0 = scmp.ge.s32.totalorder %s775_s17, 1  ;;  %s775_s17 = sphi %s811_s17, %s20_s17   ;;  %s771_s16 = sphi %s809_s16, %s965_s16   ;;  %s767_s15 = sphi %s807_s15, %s964_s15   ;;  %s763_s14 = sphi %s805_s14, %s963_s14   ;;  %s759_s13 = sphi %s803_s13, %s962_s13   ;;  %s755_s12 = sphi %s801_s12, %s961_s12  }
   0x8   : > { %p835_p1 = scmp.eq.s32.totalorder %s494_s18, 0  ;;  %p143_p2 = scmp.lt.s32.totalorder %s775_s17, 3 }
   0x9   : > { %s157_s22 = sshll.u32 %s953_s1, 4  ;;  %s777_s24 = smov [#allocation5]   ;;  %s158_s22 = int_to_ptr.hbm [resolvable:$true] %s157_s22 }
   0xa   : > { %p843_p3 = pnand %p496_p0, %p143_p2  ;;  %s159_s25 = sshll.u32 %s777_s24, 4  ;;  %s160_s25 = int_to_ptr.vmem [resolvable:$true] %s159_s25 }
   0xb   : > { %p499_p6 = scmp.ge.s32.totalorder %s775_s17, 2  ;;  %s174_s28 = sshll.u32 %s954_s2, 4  ;;  %s175_s28 = int_to_ptr.hbm [resolvable:$true] %s174_s28 }
   0xc   : > { %p524_p4 = pneg %p843_p3  ;;  %s778_s29 = smov 256  }
   0xd   : > { %s779_s30 = smov 16   ;;  %s780_s4 = smov [#allocation7]  }
   0xe   : > { %p525_p5 = pnand %p524_p4, %p835_p1  ;;  %s176_s5 = sshll.u32 %s780_s4, 4  ;;  %s177_s5 = int_to_ptr.vmem [resolvable:$true] %s176_s5 }
   0xf   : > { %s29_s6 = sadd.s32 1, %s771_s16  ;;  %s495_s7 = sadd.s32 4294967294, %s775_s17  }
  0x10   : > { %527 = dma.hbm_to_vmem [thread:$0]  (!%p525_p5), %s158_s22, 4096, %s160_s25, [#allocation6], %s778_s29, %s778_s29, %s779_s30  }
  0x11   : > { %530 = dma.hbm_to_vmem [thread:$0]  (!%p525_p5), %s175_s28, 32, %s177_s5, [#allocation6]  }
  0x12   : > { %p30_p7 = scmp.ge.s32.totalorder %s29_s6, 2  ;;  %s39_s8 = sadd.s32 1, %s763_s14 }
  0x13   : > { %p46_p8 = scmp.ne.s32.totalorder %s763_s14, %s759_s13  ;;  %p47_p9 = scmp.eq.s32.totalorder %s775_s17, 0 }
  0x14   : > { %s967_s6 = smov (%p30_p7, %s29_s6), 0  ;;  %p52_p10 = scmp.ne.s32.totalorder %s759_s13, %s755_s12 }
  0x15   : > { %s36_s9 = ssub.s32 %s771_s16, %s967_s6  ;;  %p130_p11 = scmp.eq.s32.totalorder %s494_s18, 1 }
  0x16   : > { %p37_p12 = scmp.eq.s32.totalorder %s36_s9, 0  ;;  %p871_p13 = por %p835_p1, %p52_p10 }
  0x17   : > { %p875_p0 = por %p130_p11, %p46_p8  ;;  %p136_p2 = scmp.eq.s32.totalorder %s495_s7, 1 }
  0x18   : > { %s880_s20 = scalar_select %p37_p12, %s763_s14, %s39_s8  }
  0x19   : > { %p48_p4 = por %p47_p9, %p46_p8  ;;  %p882_p5 = por %p136_p2, %p52_p10 }
  0x1a   : > { %s187_s22 = sand.u32 1, %s763_s14   ;;  %s501_s18 = sshll.u32 %s771_s16, 3 }
  0x1b   : > { %p541_p7 = scmp.lt.s32.totalorder %s775_s17, 2  ;;  %s500_s24 = sshll.u32 %s187_s22, 3 }
  0x1c   : > { %s195_s27 = scalar_lea.hbm %s952_s0, %s501_s18  ;;  %s191_s29 = scalar_lea.vmem [#allocation2], %s500_s24 }
  0x1d   : > { %s197_s28 = sshll.u32 %s195_s27, 4  ;;  %s199_s30 = sshll.u32 %s191_s29, 4  ;;  %s198_s28 = int_to_ptr.hbm [resolvable:$true] %s197_s28  ;;  %s200_s30 = int_to_ptr.vmem [resolvable:$true] %s199_s30 }
  0x1e   : > { %p532_p11 = pnand %p541_p7, %p48_p4  ;;  %s188_s4 = scalar_lea.sflag [#allocation3], %s187_s22 }
  0x1f   : > { %208 = sbr.rel (%p843_p3) target bundleno = 255 (0xff), region = 32  ;;  %s895_s5 = sand.u32 (!%p843_p3), 1, %s759_s13  }
  0x20   : > { %534 = dma.hbm_to_vmem [thread:$0]  (!%p532_p11), %s198_s28, 128, %s200_s30, %s188_s4  }
  0x21   : > { %s503_s7 = sshll.u32 (!%p843_p3), %s895_s5, 3  ;;  %s211_s8 = scalar_lea.sflag (!%p843_p3), [#allocation3], %s895_s5 }
  0x22   : > { %s901_s9 = scalar_lea.vmem (!%p843_p3), [#allocation2], %s503_s7 }
  0x24   : > { %742 = dma.done.wait (%p871_p13), %s211_s8, 128  }
  0x25   : > { %744 = vsyncadd (%p871_p13), %s211_s8, 4294967168 }
  0x26   : > { %746 = dma.done.wait (%p835_p1), [#allocation6], 4128  }
  0x27   : > { %748 = vsyncadd (%p835_p1), [#allocation6], 4294963168  ;;  %v282_v0 = vld [vmem:[#allocation5 + $0xf8] sm:$0xff]  ;;  %v280_v1 = vld [vmem:[#allocation5 + $0xe8] sm:$0xff]  ;;  %s509_s19 = sshll.u32 %s767_s15, 3  ;;  %s247_s18 = scalar_lea.vmem [#allocation8], %s503_s7 }
  0x28   : > { %309 = vmatpush.msra.mxu1 %v282_v0  ;;  %v278_v2 = vld [vmem:[#allocation5 + $0xd8] sm:$0xff]  ;;  %v276_v3 = vld [vmem:[#allocation5 + $0xc8] sm:$0xff]  ;;  %v281_v4 = vld [vmem:[#allocation5 + $0xf0] sm:$0xff]  ;;  %s387_s22 = scalar_lea.hbm %s955_s3, %s509_s19  ;;  %s389_s24 = sshll.u32 %s247_s18, 4  ;;  %s390_s24 = int_to_ptr.vmem [resolvable:$true] %s389_s24 }
  0x29   : > { %v274_v5 = vld [vmem:[#allocation5 + $0xb8] sm:$0xff]  ;;  %289 = vmatpush.msra.mxu0 %v281_v4  ;;  %v279_v6 = vld [vmem:[#allocation5 + $0xe0] sm:$0xff]  ;;  %v277_v7 = vld [vmem:[#allocation5 + $0xd0] sm:$0xff]  ;;  %s391_s25 = sshll.u32 %s387_s22, 4  ;;  %s376_s15 = scalar_lea.sflag [#allocation4], %s895_s5  ;;  %s392_s25 = int_to_ptr.hbm [resolvable:$true] %s391_s25 }
  0x2a   : > { %310 = vmatpush.msra.mxu1 %v280_v1  ;;  %v272_v8 = vld [vmem:[#allocation5 + $0xa8] sm:$0xff]  ;;  %v275_v9 = vld [vmem:[#allocation5 + $0xc0] sm:$0xff]  ;;  %v270_v10 = vld [vmem:[#allocation5 + $0x98] sm:$0xff]  ;;  %s703_s26 = sshra.s32 %s392_s25, 4  ;;  %s709_s30 = scalar_lea.hbm %s955_s3, 16  ;;  %s704_s26 = int_to_ptr.hbm [resolvable:$true] %s703_s26 }
  0x2b   : > { %290 = vmatpush.msra.mxu0 %v279_v6  ;;  %v273_v11 = vld [vmem:[#allocation5 + $0xb0] sm:$0xff]  ;;  %v268_v12 = vld [vmem:[#allocation5 + $0x88] sm:$0xff]  ;;  %v271_v13 = vld [vmem:[#allocation5 + $0xa0] sm:$0xff]  ;;  %s705_s27 = scalar_lea.hbm %s704_s26, 8  ;;  %p710_p9 = scmp.lt.s32.totalorder %s704_s26, %s955_s3 }
  0x2c   : > { %311 = vmatpush.msra.mxu1 %v278_v2  ;;  %v266_v14 = vld [vmem:[#allocation5 + $0x78] sm:$0xff]  ;;  %v269_v15 = vld [vmem:[#allocation5 + $0x90] sm:$0xff]  ;;  %v264_v16 = vld [vmem:[#allocation5 + $0x68] sm:$0xff]  ;;  %p706_p1 = scmp.ne.s32.totalorder %s704_s26, %s705_s27  ;;  %p711_p10 = scmp.lt.s32.totalorder %s709_s30, %s705_s27 }
  0x2d   : > { %291 = vmatpush.msra.mxu0 %v277_v7  ;;  %v267_v17 = vld [vmem:[#allocation5 + $0x80] sm:$0xff]  ;;  %v262_v18 = vld [vmem:[#allocation5 + $0x58] sm:$0xff]  ;;  %v265_v19 = vld [vmem:[#allocation5 + $0x70] sm:$0xff] }
  0x2e   : > { %312 = vmatpush.msra.mxu1 %v276_v3  ;;  %v260_v20 = vld [vmem:[#allocation5 + $0x48] sm:$0xff]  ;;  %v263_v21 = vld [vmem:[#allocation5 + $0x60] sm:$0xff]  ;;  %v258_v22 = vld [vmem:[#allocation5 + $0x38] sm:$0xff]  ;;  %p707_p3 = pnand %p706_p1, %p875_p0  ;;  %p712_p12 = por %p711_p10, %p710_p9 }
  0x2f   : > { %292 = vmatpush.msra.mxu0 %v275_v9  ;;  %v261_v23 = vld [vmem:[#allocation5 + $0x50] sm:$0xff]  ;;  %v256_v24 = vld [vmem:[#allocation5 + $0x28] sm:$0xff]  ;;  %v259_v25 = vld [vmem:[#allocation5 + $0x40] sm:$0xff] }
  0x30   : > { %313 = vmatpush.msra.mxu1 %v274_v5  ;;  %v254_v26 = vld [vmem:[#allocation5 + $0x18] sm:$0xff]  ;;  %v257_v27 = vld [vmem:[#allocation5 + $0x30] sm:$0xff]  ;;  %v252_v28 = vld [vmem:[#allocation5 + $0x8] sm:$0xff]  ;;  %p708_p8 = pneg %p707_p3 }
  0x31   : > { %293 = vmatpush.msra.mxu0 %v273_v11  ;;  %v250_v29 = vld [vmem:[%s901_s9] sm:$0xff]  ;;  %v255_v30 = vld [vmem:[#allocation5 + $0x20] sm:$0xff] }
  0x32   : > { %314 = vmatpush.msra.mxu1 %v272_v8  ;;  %v253_v31 = vld [vmem:[#allocation5 + $0x10] sm:$0xff]  ;;  %v251_v32 = vld [vmem:[#allocation5] sm:$0xff]  ;;  %p713_p13 = pnand %p712_p12, %p708_p8 }
  0x33   : > { %294 = vmatpush.msra.mxu0 %v271_v13  ;;  %v283_v33 = vld [vmem:[#allocation7] sm:$0x3] }
  0x34   : > { %315 = vmatpush.msra.mxu1 %v270_v10  ;;  %v286_v34 = vperm.slane %v283_v33, 1  ;;  %v285_v8 = vperm.slane %v283_v33, 0 }
  0x35   : > { %295 = vmatpush.msra.mxu0 %v269_v15 }
  0x36   : > { %316 = vmatpush.msra.mxu1 %v268_v12 }
  0x37   : > { %296 = vmatpush.msra.mxu0 %v267_v17 }
  0x38   : > { %317 = vmatpush.msra.mxu1 %v266_v14 }
  0x39   : > { %297 = vmatpush.msra.mxu0 %v265_v19 }
  0x3a   : > { %318 = vmatpush.msra.mxu1 %v264_v16 }
  0x3b   : > { %298 = vmatpush.msra.mxu0 %v263_v21 }
  0x3c   : > { %319 = vmatpush.msra.mxu1 %v262_v18 }
  0x3d   : > { %299 = vmatpush.msra.mxu0 %v261_v23 }
  0x3e   : > { %320 = vmatpush.msra.mxu1 %v260_v20 }
  0x3f   : > { %300 = vmatpush.msra.mxu0 %v259_v25 }
  0x40   : > { %321 = vmatpush.msra.mxu1 %v258_v22 }
  0x41   : > { %301 = vmatpush.msra.mxu0 %v257_v27 }
  0x42   : > { %322 = vmatpush.msra.mxu1 %v256_v24 }
  0x43   : > { %302 = vmatpush.msra.mxu0 %v255_v30 }
  0x44   : > { %323 = vmatpush.msra.mxu1 %v254_v26 }
  0x45   : > { %303 = vmatpush.msra.mxu0 %v253_v31 }
  0x46   : > { %324 = vmatpush.msra.mxu1 %v252_v28 }
  0x47   : > { %325 = vmatmul.f32.vlgmr.msra.gmra.mxu1 %v250_v29  ;;  %304 = vmatpush.msra.mxu0 %v251_v32 }
  0x48   : > { %305 = vmatmul.f32.vlgmr.msra.gmra.mxu0 %v250_v29 }
  0xc4   : > { %v326_v35 = vpop.f32.mrf.mxu1 }
  0xc5   : > { %v327_v36 = vadd.f32 %v326_v35, %v286_v34  ;;  %v306_v9 = vpop.f32.mrf.mxu0 }
  0xc6   : > { %v307_v12 = vadd.f32 %v306_v9, %v285_v8 }
  0xc7   : > { %v330_v37 = vmul.f32 0.70710677, %v327_v36  ;;  %v329_v11 = vmul.f32 0.5, %v327_v36 }
  0xc9   : > { %v331_v38 = vmul.f32 %v330_v37, %v330_v37 }
  0xcb   : > { %v332_v39 = vmin.f32 %v331_v38, 16.0 }
  0xcd   : > { %v333_v40 = vmul.f32 2.1237322e-06, %v332_v39  ;;  %v344_v41 = vmul.f32 3.8918573e-05, %v332_v39 }
  0xcf   : > { %v334_v42 = vadd.f32 0.00028619796, %v333_v40  ;;  %v345_v43 = vadd.f32 0.001143296, %v344_v41 }
  0xd1   : > { %v335_v44 = vmul.f32 %v334_v42, %v332_v39  ;;  %v346_v45 = vmul.f32 %v345_v43, %v332_v39 }
  0xd3   : > { %v347_v46 = vadd.f32 0.014752088, %v346_v45  ;;  %v336_v47 = vadd.f32 0.0036580483, %v335_v44 }
  0xd5   : > { %v348_v48 = vmul.f32 %v347_v46, %v332_v39  ;;  %v337_v50 = vmul.f32 %v336_v47, %v332_v39 }
  0xd7   : > { %v349_v49 = vadd.f32 0.112945676, %v348_v48  ;;  %v338_v53 = vadd.f32 0.05243302, %v337_v50 }
  0xd9   : > { %v350_v51 = vmul.f32 %v349_v49, %v332_v39  ;;  %v339_v56 = vmul.f32 %v338_v53, %v332_v39 }
  0xdb   : > { %v351_v52 = vadd.f32 0.4994258, %v350_v51  ;;  %v340_v57 = vadd.f32 0.18741608, %v339_v56 }
  0xdd   : > { %v352_v54 = vmul.f32 %v351_v52, %v332_v39  ;;  %v341_v59 = vmul.f32 %v340_v57, %v332_v39 }
  0xdf   : > { %v353_v55 = vadd.f32 1.0, %v352_v54  ;;  %v342_v63 = vadd.f32 1.1283791, %v341_v59 }
  0xe1   : > { %597 = vrcp.f32 %v353_v55  ;;  %v365_v62 = vand.u32 2147483648, %v353_v55  ;;  %v363_v1 = vand.u32 2147483647, %v353_v55  ;;  %vm359_vm1 = vweird.f32 %v353_v55 }
  0xe2   : > { %v343_v4 = vmul.f32 %v342_v63, %v330_v37 }
  0xe3   : > { %v366_v3 = vor.u32 1.1754944e-38, %v365_v62  ;;  %vm364_vm3 = vcmp.eq.f32.partialorder %v363_v1, 8.507059e+37 }
  0xe7   : > { %v598_v58 = vpop.eup %597 }
  0xe8   : > { %v355_v60 = vmul.f32 %v598_v58, %v353_v55  ;;  %vm360_vm0 = vweird.f32 %v598_v58 }
  0xe9   : > { %vm361_vm2 = vmor %vm359_vm1, %vm360_vm0 }
  0xea   : > { %v356_v61 = vsub.f32 1.0, %v355_v60 }
  0xec   : > { %v357_v0 = vmul.f32 %v598_v58, %v356_v61 }
  0xee   : > { %v358_v2 = vadd.f32 %v598_v58, %v357_v0 }
  0xf0   : > { %v362_v5 = vsel %vm361_vm2, %v598_v58, %v358_v2 }
  0xf1   : > { %v367_v6 = vsel %vm364_vm3, %v366_v3, %v362_v5 }
  0xf2   : > { %v368_v7 = vmul.f32 %v367_v6, %v343_v4 }
  0xf4   : > { %v507_v10 = vclamps-f32 %v368_v7, 1.0 }
  0xf6   : > { %v371_v13 = vadd.f32 1.0, %v507_v10 }
  0xf8   : > { %v372_v14 = vmul.f32 %v371_v13, %v329_v11 }
  0xfa   : > { %v373_v15 = vmul.f32 %v372_v14, %v307_v12 }
  0xfc   : > { %374 = vst [vmem:[%s247_s18] sm:$0xff] %v373_v15 }
  0xfd   : > { %716 = shalt.err (!%p713_p13)
}
  0xfe   : > { %522 = dma.vmem_to_hbm [thread:$0]  (%p875_p0), %s390_s24, 128, %s392_s25, %s376_s15  }
  0xff PF: > { %s403_s5 = sand.u32 1, %s755_s12   ;;  %p536_p2 = pnand %p499_p6, %p882_p5 }
 0x100   : > { %s404_s8 = scalar_lea.sflag [#allocation4], %s403_s5 }
 0x101   : > { %p537_p4 = pneg %p536_p2 }
 0x103   : > { %750 = dma.done.wait (%p537_p4), %s404_s8, 128  }
 0x104   : > { %752 = vsyncadd (%p537_p4), %s404_s8, 4294967168  ;;  %s20_s17 = sadd.s32 1, %s775_s17   ;;  %s961_s12 = smov %s759_s13 }
 0x105   : > { %p17_p7 = scmp.ge.s32.totalorder %s20_s17, 4   ;;  %s962_s13 = smov %s763_s14 }
 0x106   : > { %s963_s14 = smov %s880_s20  ;;  %s964_s15 = smov %s771_s16 }
 0x107   : > { %s965_s16 = smov %s967_s6  ;;  %19 = sbr.rel (!%p17_p7) target bundleno = 7 (0x7), region = 87 }
 0x10c   :  { %410 = vsyncpa [#allocation3], 1 }
 0x10d   :  { %412 = vsyncpa [#allocation3 + $0x1], 1 }
 0x10e   :  { %413 = vsyncpa [#allocation6], 1 }
 0x10f   :  { %414 = vsyncpa [#allocation4], 1 }
 0x110   :  { %416 = vsyncpa [#allocation4 + $0x1], 1 }

</bundles_post_ra>
